<compile_context>
chip_gen: v5e
topology: v5e:2x2
jax: 0.10.0
libtpu: 0.0.40
codegen_flags: <defaults>
</compile_context>

<pallas_src>
import functools

import jax
import jax.numpy as jnp
from jax.experimental import pallas as pl
from jax.experimental.pallas import tpu as pltpu


def _mtl_values(losses_ref, log_vars_ref, is_reg_ref):
    """Per-task weighted losses in f32 (shape (1, n))."""
    losses = losses_ref[...].astype(jnp.float32)
    log_vars = log_vars_ref[...].astype(jnp.float32)
    is_reg = is_reg_ref[...].astype(jnp.float32)
    # coeffs = 1/((is_reg+1)*stds**2) with stds**2 == exp(log_vars);
    # log(stds) == 0.5*log_vars.
    coeffs = 1.0 / ((is_reg + 1.0) * jnp.exp(log_vars))
    return coeffs * losses + 0.5 * log_vars


def _mtl_none_kernel(losses_ref, log_vars_ref, is_reg_ref, out_ref):
    out_ref[...] = _mtl_values(losses_ref, log_vars_ref, is_reg_ref).astype(
        out_ref.dtype
    )


def _mtl_reduce_kernel(losses_ref, log_vars_ref, is_reg_ref, out_ref, *, n_tasks,
                       mean):
    red = jnp.sum(_mtl_values(losses_ref, log_vars_ref, is_reg_ref))
    if mean:
        red = red / n_tasks
    out_ref[0, 0] = red  # scalar -> SMEM


def multi_task_loss(losses, log_vars, is_regression, reduction="none"):
    """JAX/Pallas equivalent of MultiTaskLoss.forward.

    losses:        (n_tasks,) float array
    log_vars:      (n_tasks,) learnable parameter (zeros at init), native dtype
    is_regression: (n_tasks,) regression-vs-classification indicator
    """
    n = losses.shape[0]
    dtype = losses.dtype

    # Metadata-only reshapes to (1, n) so refs land in (sublane, lane) layout.
    losses2 = losses.reshape(1, n)
    log_vars2 = log_vars.reshape(1, n)
    is_reg2 = is_regression.reshape(1, n)

    vmem = pl.BlockSpec(memory_space=pltpu.MemorySpace.VMEM)

    if reduction == "none":
        out = pl.pallas_call(
            _mtl_none_kernel,
            out_shape=jax.ShapeDtypeStruct((1, n), dtype),
            in_specs=[vmem, vmem, vmem],
            out_specs=vmem,
        )(losses2, log_vars2, is_reg2)
        return out.reshape(n)

    kern = functools.partial(
        _mtl_reduce_kernel, n_tasks=float(n), mean=(reduction == "mean")
    )
    out = pl.pallas_call(
        kern,
        out_shape=jax.ShapeDtypeStruct((1, 1), jnp.float32),
        in_specs=[vmem, vmem, vmem],
        out_specs=pl.BlockSpec(memory_space=pltpu.MemorySpace.SMEM),
    )(losses2, log_vars2, is_reg2)
    res = out[0, 0]
    if dtype != jnp.float32:
        res = res.astype(dtype)
    return res


def _reference(losses, log_vars, is_regression, reduction="none"):
    """Literal transcription of the torch forward."""
    dtype = losses.dtype
    stds = (jnp.exp(log_vars) ** 0.5).astype(dtype)
    is_reg = is_regression.astype(dtype)
    coeffs = 1.0 / ((is_reg + 1.0) * stds ** 2)
    out = coeffs * losses + jnp.log(stds)
    if reduction == "sum":
        out = out.sum()
    if reduction == "mean":
        out = out.mean()
    return out


if __name__ == "__main__":
    key = jax.random.PRNGKey(0)
    n_tasks = 4

    # Deterministic setup mirroring __init__ (log_vars = zeros at init) plus a
    # non-trivial log_vars case to exercise the exp path.
    is_regression = jnp.array([1.0, 0.0, 1.0, 0.0], dtype=jnp.float32)
    losses = jax.random.uniform(key, (n_tasks,), dtype=jnp.float32) + 0.1

    ok = True
    for log_vars in (
        jnp.zeros((n_tasks,), dtype=jnp.float32),
        jnp.array([-0.3, 0.2, 0.5, -0.1], dtype=jnp.float32),
    ):
        for reduction in ("none", "sum", "mean"):
            got = jax.block_until_ready(
                multi_task_loss(losses, log_vars, is_regression,
                                reduction=reduction)
            )
            want = _reference(losses, log_vars, is_regression,
                              reduction=reduction)
            ok &= bool(jnp.allclose(got, want, rtol=1e-5, atol=1e-5))

    if ok:
        print("KERNEL_OK")
    else:
        print("KERNEL_MISMATCH")
</pallas_src>

<mosaic_0001>
module attributes {stable_mosaic.version = 11 : i64} {
  func.func @_mtl_none_kernel(%arg0: memref<1x4xf32, #tpu.memory_space<vmem>>, %arg1: memref<1x4xf32, #tpu.memory_space<vmem>>, %arg2: memref<1x4xf32, #tpu.memory_space<vmem>>, %arg3: memref<1x4xf32, #tpu.memory_space<vmem>>) attributes {dimension_semantics = [], scalar_prefetch = 0 : i64, scratch_operands = 0 : i64, tpu.core_type = #tpu.core_type<tc>} {
    %c0 = arith.constant 0 : index
    %c0_0 = arith.constant 0 : index
    %0 = vector.load %arg0[%c0, %c0_0] : memref<1x4xf32, #tpu.memory_space<vmem>>, vector<1x4xf32>
    %c0_1 = arith.constant 0 : index
    %c0_2 = arith.constant 0 : index
    %1 = vector.load %arg1[%c0_1, %c0_2] : memref<1x4xf32, #tpu.memory_space<vmem>>, vector<1x4xf32>
    %c0_3 = arith.constant 0 : index
    %c0_4 = arith.constant 0 : index
    %2 = vector.load %arg2[%c0_3, %c0_4] : memref<1x4xf32, #tpu.memory_space<vmem>>, vector<1x4xf32>
    %cst = arith.constant 1.000000e+00 : f32
    %3 = vector.broadcast %cst : f32 to vector<1x4xf32>
    %4 = arith.addf %2, %3 : vector<1x4xf32>
    %5 = math.exp %1 : vector<1x4xf32>
    %6 = arith.mulf %4, %5 : vector<1x4xf32>
    %cst_5 = arith.constant 1.000000e+00 : f32
    %7 = vector.broadcast %cst_5 : f32 to vector<1x4xf32>
    %8 = arith.divf %7, %6 : vector<1x4xf32>
    %9 = arith.mulf %8, %0 : vector<1x4xf32>
    %cst_6 = arith.constant 5.000000e-01 : f32
    %10 = vector.broadcast %cst_6 : f32 to vector<1x4xf32>
    %11 = arith.mulf %10, %1 : vector<1x4xf32>
    %12 = arith.addf %9, %11 : vector<1x4xf32>
    %c0_7 = arith.constant 0 : index
    %c0_8 = arith.constant 0 : index
    %13 = vector.load %arg3[%c0_7, %c0_8] : memref<1x4xf32, #tpu.memory_space<vmem>>, vector<1x4xf32>
    tpu.vector_store %arg3[%c0_7, %c0_8], %12 {strides = array<i32>} : memref<1x4xf32, #tpu.memory_space<vmem>>, vector<1x4xf32>,
    return
  }
}

</mosaic_0001>

<bundles_post_ra>
// kernel: tpu_custom_call.1
= control target key start
LH: loop header
LB: loop body
LE: loop exit
PB: predicated region body
PF: predicated region fallthrough
CT: control target
= control target key end

     0   :  { %8 = vsyncpa [#allocation3], 0  ;;  %s208_s0 = inlined_call_operand.hbm [shape: f32[1,4], index: 0, kind: input, shape index: {}]   ;;  %s209_s1 = inlined_call_operand.hbm [shape: f32[1,4], index: 1, kind: input, shape index: {}]   ;;  %s210_s2 = inlined_call_operand.vmem [shape: f32[1,4], index: 2, kind: input, shape index: {}]   ;;  %s211_s3 = inlined_call_operand.hbm [shape: f32[1,4], index: 3, kind: output, shape index: {}]  }
   0x1   :  { %9 = vsyncpa [#allocation6], 0 }
   0x2   :  { %10 = vsyncpa [#allocation4], 0  ;;  %s16_s14 = sshll.u32 %s208_s0, 4  ;;  %s173_s15 = smov [#allocation2]   ;;  %s17_s14 = int_to_ptr.hbm [resolvable:$true] %s16_s14 }
   0x3   :  { %s18_s16 = sshll.u32 %s173_s15, 4  ;;  %s27_s19 = sshll.u32 %s209_s1, 4  ;;  %s19_s16 = int_to_ptr.vmem [resolvable:$true] %s18_s16  ;;  %s28_s19 = int_to_ptr.hbm [resolvable:$true] %s27_s19 }
   0x4   :  { %21 = dma.hbm_to_vmem [thread:$0]  %s17_s14, 16, %s19_s16, [#allocation3]  }
   0x5   :  { %s174_s20 = smov [#allocation5]  }
   0x6   :  { %s29_s21 = sshll.u32 %s174_s20, 4  ;;  %s30_s21 = int_to_ptr.vmem [resolvable:$true] %s29_s21 }
   0x7   :  { %32 = dma.hbm_to_vmem [thread:$0]  %s28_s19, 16, %s30_s21, [#allocation6]  }
   0x8   :  { %167 = dma.done.wait [#allocation3], 16  }
   0x9   :  { %168 = vsyncadd [#allocation3], 4294967280 }
   0xa   :  { %169 = dma.done.wait [#allocation6], 16  }
   0xb   :  { %170 = vsyncadd [#allocation6], 4294967280  ;;  %v44_v0 = vld [vmem:[#allocation5] sm:$0x1]  ;;  %v45_v2 = vld [vmem:[%s210_s2] sm:$0x1] }
   0xc   :  { %v47_v1 = vmul.f32 1.442695, %v44_v0  ;;  %v46_v3 = vadd.f32 1.0, %v45_v2  ;;  %v43_v14 = vld [vmem:[#allocation2] sm:$0x1]  ;;  %v66_v16 = vmul.f32 0.5, %v44_v0 }
   0xd   :  { %s175_s1 = smov [#allocation7]   ;;  %s77_s25 = sshll.u32 %s211_s3, 4  ;;  %vm68_vm4 = vcmask 24576   ;;  %s78_s25 = int_to_ptr.hbm [resolvable:$true] %s77_s25 }
   0xe   :  { %91 = vpow2.f32 %v47_v1  ;;  %s75_s2 = sshll.u32 %s175_s1, 4  ;;  %s76_s2 = int_to_ptr.vmem [resolvable:$true] %s75_s2 }
  0x14   :  { %v92_v4 = vpop.eup %91 }
  0x15   :  { %v49_v5 = vmul.f32 %v92_v4, %v46_v3 }
  0x17   :  { %93 = vrcp.f32 %v49_v5  ;;  %v61_v8 = vand.u32 2147483648, %v49_v5  ;;  %vm55_vm0 = vweird.f32 %v49_v5  ;;  %v59_v10 = vand.u32 2147483647, %v49_v5 }
  0x19   :  { %v62_v12 = vor.u32 1.1754944e-38, %v61_v8  ;;  %vm60_vm3 = vcmp.eq.f32.partialorder %v59_v10, 8.507059e+37 }
  0x1d   :  { %v94_v6 = vpop.eup %93 }
  0x1e   :  { %v51_v7 = vmul.f32 %v94_v6, %v49_v5  ;;  %vm56_vm1 = vweird.f32 %v94_v6 }
  0x1f   :  { %vm57_vm2 = vmor %vm55_vm0, %vm56_vm1 }
  0x20   :  { %v52_v9 = vsub.f32 1.0, %v51_v7 }
  0x22   :  { %v53_v11 = vmul.f32 %v94_v6, %v52_v9 }
  0x24   :  { %v54_v13 = vadd.f32 %v94_v6, %v53_v11 }
  0x26   :  { %v58_v15 = vsel %vm57_vm2, %v94_v6, %v54_v13 }
  0x27   :  { %v63_v17 = vsel %vm60_vm3, %v62_v12, %v58_v15 }
  0x28   :  { %v65_v18 = vmul.f32 %v63_v17, %v43_v14 }
  0x2a   :  { %v67_v19 = vadd.f32 %v66_v16, %v65_v18 }
  0x2c   :  { %69 = vst.msk [vmem:[#allocation7] sm:$0x1] %vm68_vm4, %v67_v19 }
  0x2d   :  { %80 = dma.vmem_to_hbm [thread:$0]  %s76_s2, 16, %s78_s25, [#allocation4]  }
  0x2e   :  { %171 = dma.done.wait [#allocation4], 16  }
  0x2f   :  { %172 = vsyncadd [#allocation4], 4294967280 }
  0x30   :  { %85 = vsyncpa [#allocation3], 1 }
  0x31   :  { %86 = vsyncpa [#allocation6], 1 }
  0x32   :  { %87 = vsyncpa [#allocation4], 1 }

</bundles_post_ra>
